<compile_context>
chip_gen: v5e
topology: v5e:2x2
jax: 0.10.0
libtpu: 0.0.40
codegen_flags: <defaults>
</compile_context>

<pallas_src>
import jax
import jax.numpy as jnp
from jax.experimental import pallas as pl
from jax.experimental.pallas import tpu as pltpu

# --- model dimensions (shrunk synthetic version of the original 256/512) ---
N_CLASSES = 10
N_DOMAINS = 4
N_EXPERTS = 3
FEAT_DIM = 32          # backbone out_dim      (256 in the original)
BACKBONE_FEATS = 64    # resnet.fc.in_features (512 in the original)
EXPERT_HIDDEN = 128
KH = KW = 3
CIN = 3

# --- derived / padded layout constants ---
KRAW = KH * KW * CIN                      # 27
KPAD = 32                                 # im2col K padded to 32 lanes
COUT = BACKBONE_FEATS                     # 64
HEAD_W = N_CLASSES + N_DOMAINS + N_EXPERTS   # 17  (causal | style | gate)
HEAD_PAD = 32                             # head block padded to 32 lanes
W1W = N_EXPERTS * EXPERT_HIDDEN           # 384
FEATW = HEAD_PAD + W1W                    # 416  (heads | experts fc1)
W2W = N_EXPERTS * N_CLASSES               # 30
OUTW = 128                                # lane-padded output row

# bias-slab column offsets
OFF_BCONV = 0
OFF_BB = COUT                             # 64
OFF_BHEAD = OFF_BB + FEAT_DIM             # 96
OFF_B2 = OFF_BHEAD + FEATW                # 512
BIAS_W = OFF_B2 + W2W                     # 542


# ----------------------------------------------------------------------------
# Fused kernel (one grid step == one image):
#   conv(im2col matmul) + ReLU + GAP(sublane reduce) + backbone fc +
#   heads/experts-fc1 (one dot) + experts-fc2 + gating + mixture -> one row
# ----------------------------------------------------------------------------
def _softmax_rows(z):
    z = z - jnp.max(z, axis=1, keepdims=True)
    z = jnp.exp(z)
    # EUP approximate reciprocal (own VLIW slot) instead of VALU divide.
    return z * pl.reciprocal(jnp.sum(z, axis=1, keepdims=True), approx=True)


def cadrup_kernel(patches_ref, wconv_ref, wb_ref, wfeat_ref, w2_ref, bias_ref,
                  out_ref):
    # patches : (HW, KPAD)        bf16 im2col patch matrix for this image
    # wconv   : (KPAD, COUT)      bf16 flattened HWIO conv weight (zero-padded)
    # wb      : (COUT, FEAT_DIM)  bf16 backbone fc
    # wfeat   : (FEAT_DIM, FEATW) bf16 [causal|style|gate|pad | experts fc1]
    # w2      : (W1W, W2W)        bf16 block-diagonal experts fc2
    # bias    : (1, BIAS_W)       f32  [bconv | bb | head biases pad | b1 | b2]
    # out     : (1, OUTW)         f32  [final | causal | style | zeros]
    f32 = jnp.float32
    bf16 = jnp.bfloat16
    bias = bias_ref[...]

    # conv 3x3 (pad=1) as one bf16 MXU matmul with f32 accumulation, +bias, ReLU
    acc = jnp.dot(patches_ref[...], wconv_ref[...], preferred_element_type=f32)
    acc = jnp.maximum(acc + bias[:, OFF_BCONV:OFF_BB], 0.0)        # (HW, COUT)

    # global average pool: sublane reduction (no pooling-matrix matmul)
    gap = jnp.sum(acc, axis=0, keepdims=True) * (1.0 / acc.shape[0])  # (1, COUT)

    # SharedBackbone fc (dropout is identity at inference)
    feats = jnp.dot(gap.astype(bf16), wb_ref[...],
                    preferred_element_type=f32) + bias[:, OFF_BB:OFF_BHEAD]

    # CausalHead | StyleHead | GatingNetwork | all experts' fc1 in ONE matmul
    hfull = jnp.dot(feats.astype(bf16), wfeat_ref[...],
                    preferred_element_type=f32) + bias[:, OFF_BHEAD:OFF_B2]

    causal_style = hfull[:, :N_CLASSES + N_DOMAINS]                 # (1, 14)
    # gating: softmax(fc(feats) - uncertainties), uncertainties == 0
    gates = _softmax_rows(
        hfull[:, N_CLASSES + N_DOMAINS:N_CLASSES + N_DOMAINS + N_EXPERTS])

    # Experts: ReLU(fc1) then one block-diagonal fc2 dot.
    h = jnp.maximum(hfull[:, HEAD_PAD:], 0.0)                       # (1, W1W)
    logits = jnp.dot(h.astype(bf16), w2_ref[...],
                     preferred_element_type=f32) + bias[:, OFF_B2:]  # (1, W2W)

    # Per-expert softmax + gated mixture (tiny 2-D lane slices, unrolled).
    final = jnp.zeros((logits.shape[0], N_CLASSES), dtype=f32)
    for e in range(N_EXPERTS):
        p = _softmax_rows(logits[:, e * N_CLASSES:(e + 1) * N_CLASSES])
        final = final + gates[:, e:e + 1] * p

    # single lane-dense (1, 128) store: [final | causal | style | zeros]
    pad = jnp.zeros((final.shape[0], OUTW - 2 * N_CLASSES - N_DOMAINS), dtype=f32)
    out_ref[...] = jnp.concatenate([final, causal_style, pad], axis=-1)


# ----------------------------------------------------------------------------
# Wrapper
# ----------------------------------------------------------------------------
@jax.jit
def cadrup_forward(x_nchw, p):
    B, _, H, W = x_nchw.shape
    HW = H * W
    bf16 = jnp.bfloat16

    # NCHW -> NHWC, zero-pad spatial dims by 1 (conv padding=1)
    x = jnp.transpose(x_nchw, (0, 2, 3, 1)).astype(jnp.float32)
    xpad = jnp.pad(x, ((0, 0), (1, 1), (1, 1), (0, 0)))

    # im2col -> lane-dense (B, HW, KPAD) bf16 patch tensor (K padded 27 -> 32)
    cols = [xpad[:, kh:kh + H, kw:kw + W, :] for kh in range(KH) for kw in range(KW)]
    patches = jnp.concatenate(cols, axis=-1).reshape(B, HW, KRAW)
    patches = jnp.pad(patches, ((0, 0), (0, 0), (0, KPAD - KRAW))).astype(bf16)

    # weight repacking (tiny; folded by XLA outside the kernel)
    wconv = jnp.pad(p['wconv'].reshape(KRAW, COUT),
                    ((0, KPAD - KRAW), (0, 0))).astype(bf16)          # (KPAD, COUT)
    wb = p['wb'].astype(bf16)                                          # (COUT, F)
    zcol = jnp.zeros((FEAT_DIM, HEAD_PAD - HEAD_W), jnp.float32)
    w1flat = jnp.transpose(p['w1'], (1, 0, 2)).reshape(FEAT_DIM, W1W)
    wfeat = jnp.concatenate([p['wc'], p['ws'], p['wg'], zcol, w1flat],
                            axis=1).astype(bf16)                       # (F, FEATW)
    w2_blocks = []
    for e in range(N_EXPERTS):
        left = jnp.zeros((EXPERT_HIDDEN, e * N_CLASSES), jnp.float32)
        right = jnp.zeros((EXPERT_HIDDEN, (N_EXPERTS - 1 - e) * N_CLASSES), jnp.float32)
        w2_blocks.append(jnp.concatenate([left, p['w2'][e], right], axis=1))
    w2bd = jnp.concatenate(w2_blocks, axis=0).astype(bf16)             # (W1W, W2W)

    # one f32 bias slab: [bconv | bb | bc|bs|bg|pad | b1 | b2]
    zb = jnp.zeros((1, HEAD_PAD - HEAD_W), jnp.float32)
    b1flat = p['b1'].reshape(1, W1W)
    b2flat = p['b2'].reshape(1, W2W)
    bias = jnp.concatenate([p['bconv'], p['bb'], p['bc'], p['bs'], p['bg'],
                            zb, b1flat, b2flat], axis=1)               # (1, BIAS_W)

    out = pl.pallas_call(
        cadrup_kernel,
        out_shape=jax.ShapeDtypeStruct((B, 1, OUTW), jnp.float32),
        grid=(B,),
        in_specs=[
            pl.BlockSpec((None, HW, KPAD), lambda b: (b, 0, 0)),   # per-image patches
            pl.BlockSpec((KPAD, COUT), lambda b: (0, 0)),          # weights: resident
            pl.BlockSpec((COUT, FEAT_DIM), lambda b: (0, 0)),
            pl.BlockSpec((FEAT_DIM, FEATW), lambda b: (0, 0)),
            pl.BlockSpec((W1W, W2W), lambda b: (0, 0)),
            pl.BlockSpec((1, BIAS_W), lambda b: (0, 0)),
        ],
        out_specs=pl.BlockSpec((None, 1, OUTW), lambda b: (b, 0, 0)),
        compiler_params=pltpu.CompilerParams(
            dimension_semantics=("parallel",)),    # megacore on v7x, no-op on v5e/v6e
    )(patches, wconv, wb, wfeat, w2bd, bias)

    out = out.reshape(B, OUTW)
    final = out[:, :N_CLASSES]
    causal = out[:, N_CLASSES:2 * N_CLASSES]
    style = out[:, 2 * N_CLASSES:2 * N_CLASSES + N_DOMAINS]
    # mc_dropout=False path: uncertainties are a compile-time constant zero.
    unc = jnp.zeros((B, N_EXPERTS), jnp.float32)
    return final, causal, style, unc


# ----------------------------------------------------------------------------
# Pure-JAX reference (same math, f32, no Pallas) for validation
# ----------------------------------------------------------------------------
def reference_forward(x_nchw, p):
    x = jnp.transpose(x_nchw, (0, 2, 3, 1)).astype(jnp.float32)
    conv = jax.lax.conv_general_dilated(
        x, p['wconv'], window_strides=(1, 1), padding='SAME',
        dimension_numbers=('NHWC', 'HWIO', 'NHWC'))
    conv = jnp.maximum(conv + p['bconv'][0], 0.0)
    gapf = jnp.mean(conv, axis=(1, 2))
    feats = gapf @ p['wb'] + p['bb'][0]
    causal = feats @ p['wc'] + p['bc'][0]
    style = feats @ p['ws'] + p['bs'][0]
    gates = jax.nn.softmax(feats @ p['wg'] + p['bg'][0], axis=1)
    probs = []
    for e in range(N_EXPERTS):
        h = jnp.maximum(feats @ p['w1'][e] + p['b1'][e], 0.0)
        probs.append(jax.nn.softmax(h @ p['w2'][e] + p['b2'][e], axis=1))
    stack = jnp.stack(probs, axis=1)
    final = jnp.sum(gates[..., None] * stack, axis=1)
    unc = jnp.zeros((x.shape[0], N_EXPERTS), jnp.float32)
    return final, causal, style, unc


# ----------------------------------------------------------------------------
# Deterministic parameter init (synthetic; shapes follow the module __init__)
# ----------------------------------------------------------------------------
def init_params(key):
    ks = jax.random.split(key, 14)
    n = lambda k, shape, s: (jax.random.normal(k, shape, jnp.float32) * s)
    p = {
        'wconv': n(ks[0], (KH, KW, CIN, BACKBONE_FEATS), 0.1),
        'bconv': n(ks[1], (1, BACKBONE_FEATS), 0.02),
        'wb':    n(ks[2], (BACKBONE_FEATS, FEAT_DIM), 0.08),
        'bb':    n(ks[3], (1, FEAT_DIM), 0.02),
        'wc':    n(ks[4], (FEAT_DIM, N_CLASSES), 0.08),
        'bc':    n(ks[5], (1, N_CLASSES), 0.02),
        'ws':    n(ks[6], (FEAT_DIM, N_DOMAINS), 0.08),
        'bs':    n(ks[7], (1, N_DOMAINS), 0.02),
        'wg':    n(ks[8], (FEAT_DIM, N_EXPERTS), 0.08),
        'bg':    n(ks[9], (1, N_EXPERTS), 0.02),
        'w1':    n(ks[10], (N_EXPERTS, FEAT_DIM, EXPERT_HIDDEN), 0.08),
        'b1':    n(ks[11], (N_EXPERTS, EXPERT_HIDDEN), 0.02),
        'w2':    n(ks[12], (N_EXPERTS, EXPERT_HIDDEN, N_CLASSES), 0.08),
        'b2':    n(ks[13], (N_EXPERTS, N_CLASSES), 0.02),
    }
    return p


if __name__ == "__main__":
    key = jax.random.PRNGKey(0)
    kx, kp = jax.random.split(key)
    x = jax.random.normal(kx, (2, CIN, 16, 16), jnp.float32)   # NCHW, like PyTorch
    params = init_params(kp)

    outs = cadrup_forward(x, params)
    outs = jax.block_until_ready(outs)

    refs = reference_forward(x, params)
    names = ["final_output", "causal_logits", "style_logits", "uncertainties"]
    # tolerance covers the bf16 MXU matmul operands and the EUP approximate
    # reciprocal used for the softmax denominators (reference is exact f32).
    for name, o, r in zip(names, outs, refs):
        assert o.shape == r.shape, (name, o.shape, r.shape)
        assert jnp.allclose(o, r, atol=1e-2, rtol=1e-2), (
            name, float(jnp.max(jnp.abs(o - r))))

    print("KERNEL_OK")
</pallas_src>

<mosaic_0001>
module attributes {stable_mosaic.version = 11 : i64} {
  func.func @cadrup_kernel(%arg0: i32, %arg1: memref<1x256x32xbf16, #tpu.memory_space<vmem>>, %arg2: memref<32x64xbf16, #tpu.memory_space<vmem>>, %arg3: memref<64x32xbf16, #tpu.memory_space<vmem>>, %arg4: memref<32x416xbf16, #tpu.memory_space<vmem>>, %arg5: memref<384x30xbf16, #tpu.memory_space<vmem>>, %arg6: memref<1x542xf32, #tpu.memory_space<vmem>>, %arg7: memref<1x1x128xf32, #tpu.memory_space<vmem>>) attributes {dimension_semantics = [#tpu.dimension_semantics<parallel>], iteration_bounds = array<i64: 2>, scalar_prefetch = 0 : i64, scratch_operands = 0 : i64, tpu.core_type = #tpu.core_type<tc>, window_params = [{transform_indices = @transform_0, window_bounds = array<i64: 1, 256, 32>}, {pipeline_mode = #tpu.pipeline_mode<synchronous>, transform_indices = @transform_1, window_bounds = array<i64: 32, 64>}, {pipeline_mode = #tpu.pipeline_mode<synchronous>, transform_indices = @transform_2, window_bounds = array<i64: 64, 32>}, {pipeline_mode = #tpu.pipeline_mode<synchronous>, transform_indices = @transform_3, window_bounds = array<i64: 32, 416>}, {pipeline_mode = #tpu.pipeline_mode<synchronous>, transform_indices = @transform_4, window_bounds = array<i64: 384, 30>}, {pipeline_mode = #tpu.pipeline_mode<synchronous>, transform_indices = @transform_5, window_bounds = array<i64: 1, 542>}, {transform_indices = @transform_6, window_bounds = array<i64: 1, 1, 128>}]} {
    %c0 = arith.constant 0 : index
    %c0_0 = arith.constant 0 : index
    %0 = vector.load %arg6[%c0, %c0_0] : memref<1x542xf32, #tpu.memory_space<vmem>>, vector<1x542xf32>
    %c0_1 = arith.constant 0 : index
    %c0_2 = arith.constant 0 : index
    %c0_3 = arith.constant 0 : index
    %1 = vector.load %arg1[%c0_1, %c0_2, %c0_3] : memref<1x256x32xbf16, #tpu.memory_space<vmem>>, vector<1x256x32xbf16>
    %2 = vector.shape_cast %1 : vector<1x256x32xbf16> to vector<256x32xbf16>
    %c0_4 = arith.constant 0 : index
    %c0_5 = arith.constant 0 : index
    %3 = vector.load %arg2[%c0_4, %c0_5] : memref<32x64xbf16, #tpu.memory_space<vmem>>, vector<32x64xbf16>
    %cst = arith.constant dense<0.000000e+00> : vector<256x64xf32>
    %4 = tpu.matmul %2, %3, %cst {dimension_numbers = #tpu.dot_dimension_numbers<[1], [0], [0], [1], [0, 0, 1, 1], [], []>} : vector<256x32xbf16>, vector<32x64xbf16>, vector<256x64xf32> -> vector<256x64xf32>
    %5 = vector.extract_strided_slice %0 {offsets = [0, 0], sizes = [1, 64], strides = [1, 1]} : vector<1x542xf32> to vector<1x64xf32>
    %6 = vector.broadcast %5 : vector<1x64xf32> to vector<256x64xf32>
    %7 = arith.addf %4, %6 : vector<256x64xf32>
    %cst_6 = arith.constant 0.000000e+00 : f32
    %8 = vector.broadcast %cst_6 : f32 to vector<256x64xf32>
    %9 = arith.maximumf %7, %8 : vector<256x64xf32>
    %cst_7 = arith.constant dense<0.000000e+00> : vector<64xf32>
    %10 = vector.multi_reduction <add>, %9, %cst_7 [0] : vector<256x64xf32> to vector<64xf32>
    %11 = vector.shape_cast %10 : vector<64xf32> to vector<1x64xf32>
    %cst_8 = arith.constant 3.906250e-03 : f32
    %12 = vector.broadcast %cst_8 : f32 to vector<1x64xf32>
    %13 = arith.mulf %11, %12 : vector<1x64xf32>
    %14 = arith.truncf %13 : vector<1x64xf32> to vector<1x64xbf16>
    %c0_9 = arith.constant 0 : index
    %c0_10 = arith.constant 0 : index
    %15 = vector.load %arg3[%c0_9, %c0_10] : memref<64x32xbf16, #tpu.memory_space<vmem>>, vector<64x32xbf16>
    %cst_11 = arith.constant dense<0.000000e+00> : vector<1x32xf32>
    %16 = tpu.matmul %14, %15, %cst_11 {dimension_numbers = #tpu.dot_dimension_numbers<[1], [0], [0], [1], [0, 0, 1, 1], [], []>} : vector<1x64xbf16>, vector<64x32xbf16>, vector<1x32xf32> -> vector<1x32xf32>
    %17 = vector.extract_strided_slice %0 {offsets = [0, 64], sizes = [1, 32], strides = [1, 1]} : vector<1x542xf32> to vector<1x32xf32>
    %18 = arith.addf %16, %17 : vector<1x32xf32>
    %19 = arith.truncf %18 : vector<1x32xf32> to vector<1x32xbf16>
    %c0_12 = arith.constant 0 : index
    %c0_13 = arith.constant 0 : index
    %20 = vector.load %arg4[%c0_12, %c0_13] : memref<32x416xbf16, #tpu.memory_space<vmem>>, vector<32x416xbf16>
    %cst_14 = arith.constant dense<0.000000e+00> : vector<1x416xf32>
    %21 = tpu.matmul %19, %20, %cst_14 {dimension_numbers = #tpu.dot_dimension_numbers<[1], [0], [0], [1], [0, 0, 1, 1], [], []>} : vector<1x32xbf16>, vector<32x416xbf16>, vector<1x416xf32> -> vector<1x416xf32>
    %22 = vector.extract_strided_slice %0 {offsets = [0, 96], sizes = [1, 416], strides = [1, 1]} : vector<1x542xf32> to vector<1x416xf32>
    %23 = arith.addf %21, %22 : vector<1x416xf32>
    %24 = vector.extract_strided_slice %23 {offsets = [0, 0], sizes = [1, 14], strides = [1, 1]} : vector<1x416xf32> to vector<1x14xf32>
    %25 = vector.extract_strided_slice %23 {offsets = [0, 14], sizes = [1, 3], strides = [1, 1]} : vector<1x416xf32> to vector<1x3xf32>
    %cst_15 = arith.constant dense<0xFF800000> : vector<1xf32>
    %26 = vector.multi_reduction <maximumf>, %25, %cst_15 [1] : vector<1x3xf32> to vector<1xf32>
    %27 = vector.shape_cast %26 : vector<1xf32> to vector<1x1xf32>
    %28 = vector.broadcast %27 : vector<1x1xf32> to vector<1x3xf32>
    %29 = arith.subf %25, %28 : vector<1x3xf32>
    %30 = math.exp %29 : vector<1x3xf32>
    %cst_16 = arith.constant dense<0.000000e+00> : vector<1xf32>
    %31 = vector.multi_reduction <add>, %30, %cst_16 [1] : vector<1x3xf32> to vector<1xf32>
    %32 = vector.shape_cast %31 : vector<1xf32> to vector<1x1xf32>
    %33 = tpu.reciprocal %32 {approx = true} : vector<1x1xf32> -> vector<1x1xf32>
    %34 = vector.broadcast %33 : vector<1x1xf32> to vector<1x3xf32>
    %35 = arith.mulf %30, %34 : vector<1x3xf32>
    %36 = vector.extract_strided_slice %23 {offsets = [0, 32], sizes = [1, 384], strides = [1, 1]} : vector<1x416xf32> to vector<1x384xf32>
    %cst_17 = arith.constant 0.000000e+00 : f32
    %37 = vector.broadcast %cst_17 : f32 to vector<1x384xf32>
    %38 = arith.maximumf %36, %37 : vector<1x384xf32>
    %39 = arith.truncf %38 : vector<1x384xf32> to vector<1x384xbf16>
    %c0_18 = arith.constant 0 : index
    %c0_19 = arith.constant 0 : index
    %40 = vector.load %arg5[%c0_18, %c0_19] : memref<384x30xbf16, #tpu.memory_space<vmem>>, vector<384x30xbf16>
    %cst_20 = arith.constant dense<0.000000e+00> : vector<1x30xf32>
    %41 = tpu.matmul %39, %40, %cst_20 {dimension_numbers = #tpu.dot_dimension_numbers<[1], [0], [0], [1], [0, 0, 1, 1], [], []>} : vector<1x384xbf16>, vector<384x30xbf16>, vector<1x30xf32> -> vector<1x30xf32>
    %42 = vector.extract_strided_slice %0 {offsets = [0, 512], sizes = [1, 30], strides = [1, 1]} : vector<1x542xf32> to vector<1x30xf32>
    %43 = arith.addf %41, %42 : vector<1x30xf32>
    %cst_21 = arith.constant 0.000000e+00 : f32
    %44 = vector.broadcast %cst_21 : f32 to vector<1x10xf32>
    %45 = vector.extract_strided_slice %43 {offsets = [0, 0], sizes = [1, 10], strides = [1, 1]} : vector<1x30xf32> to vector<1x10xf32>
    %cst_22 = arith.constant dense<0xFF800000> : vector<1xf32>
    %46 = vector.multi_reduction <maximumf>, %45, %cst_22 [1] : vector<1x10xf32> to vector<1xf32>
    %47 = vector.shape_cast %46 : vector<1xf32> to vector<1x1xf32>
    %48 = vector.broadcast %47 : vector<1x1xf32> to vector<1x10xf32>
    %49 = arith.subf %45, %48 : vector<1x10xf32>
    %50 = math.exp %49 : vector<1x10xf32>
    %cst_23 = arith.constant dense<0.000000e+00> : vector<1xf32>
    %51 = vector.multi_reduction <add>, %50, %cst_23 [1] : vector<1x10xf32> to vector<1xf32>
    %52 = vector.shape_cast %51 : vector<1xf32> to vector<1x1xf32>
    %53 = tpu.reciprocal %52 {approx = true} : vector<1x1xf32> -> vector<1x1xf32>
    %54 = vector.broadcast %53 : vector<1x1xf32> to vector<1x10xf32>
    %55 = arith.mulf %50, %54 : vector<1x10xf32>
    %56 = vector.extract_strided_slice %35 {offsets = [0, 0], sizes = [1, 1], strides = [1, 1]} : vector<1x3xf32> to vector<1x1xf32>
    %57 = vector.broadcast %56 : vector<1x1xf32> to vector<1x10xf32>
    %58 = arith.mulf %57, %55 : vector<1x10xf32>
    %59 = arith.addf %44, %58 : vector<1x10xf32>
    %60 = vector.extract_strided_slice %43 {offsets = [0, 10], sizes = [1, 10], strides = [1, 1]} : vector<1x30xf32> to vector<1x10xf32>
    %cst_24 = arith.constant dense<0xFF800000> : vector<1xf32>
    %61 = vector.multi_reduction <maximumf>, %60, %cst_24 [1] : vector<1x10xf32> to vector<1xf32>
    %62 = vector.shape_cast %61 : vector<1xf32> to vector<1x1xf32>
    %63 = vector.broadcast %62 : vector<1x1xf32> to vector<1x10xf32>
    %64 = arith.subf %60, %63 : vector<1x10xf32>
    %65 = math.exp %64 : vector<1x10xf32>
    %cst_25 = arith.constant dense<0.000000e+00> : vector<1xf32>
    %66 = vector.multi_reduction <add>, %65, %cst_25 [1] : vector<1x10xf32> to vector<1xf32>
    %67 = vector.shape_cast %66 : vector<1xf32> to vector<1x1xf32>
    %68 = tpu.reciprocal %67 {approx = true} : vector<1x1xf32> -> vector<1x1xf32>
    %69 = vector.broadcast %68 : vector<1x1xf32> to vector<1x10xf32>
    %70 = arith.mulf %65, %69 : vector<1x10xf32>
    %71 = vector.extract_strided_slice %35 {offsets = [0, 1], sizes = [1, 1], strides = [1, 1]} : vector<1x3xf32> to vector<1x1xf32>
    %72 = vector.broadcast %71 : vector<1x1xf32> to vector<1x10xf32>
    %73 = arith.mulf %72, %70 : vector<1x10xf32>
    %74 = arith.addf %59, %73 : vector<1x10xf32>
    %75 = vector.extract_strided_slice %43 {offsets = [0, 20], sizes = [1, 10], strides = [1, 1]} : vector<1x30xf32> to vector<1x10xf32>
    %cst_26 = arith.constant dense<0xFF800000> : vector<1xf32>
    %76 = vector.multi_reduction <maximumf>, %75, %cst_26 [1] : vector<1x10xf32> to vector<1xf32>
    %77 = vector.shape_cast %76 : vector<1xf32> to vector<1x1xf32>
    %78 = vector.broadcast %77 : vector<1x1xf32> to vector<1x10xf32>
    %79 = arith.subf %75, %78 : vector<1x10xf32>
    %80 = math.exp %79 : vector<1x10xf32>
    %cst_27 = arith.constant dense<0.000000e+00> : vector<1xf32>
    %81 = vector.multi_reduction <add>, %80, %cst_27 [1] : vector<1x10xf32> to vector<1xf32>
    %82 = vector.shape_cast %81 : vector<1xf32> to vector<1x1xf32>
    %83 = tpu.reciprocal %82 {approx = true} : vector<1x1xf32> -> vector<1x1xf32>
    %84 = vector.broadcast %83 : vector<1x1xf32> to vector<1x10xf32>
    %85 = arith.mulf %80, %84 : vector<1x10xf32>
    %86 = vector.extract_strided_slice %35 {offsets = [0, 2], sizes = [1, 1], strides = [1, 1]} : vector<1x3xf32> to vector<1x1xf32>
    %87 = vector.broadcast %86 : vector<1x1xf32> to vector<1x10xf32>
    %88 = arith.mulf %87, %85 : vector<1x10xf32>
    %89 = arith.addf %74, %88 : vector<1x10xf32>
    %cst_28 = arith.constant 0.000000e+00 : f32
    %90 = vector.broadcast %cst_28 : f32 to vector<1x104xf32>
    %91 = tpu.concatenate %89, %24, %90 in 1 : vector<1x10xf32>, vector<1x14xf32>, vector<1x104xf32> -> vector<1x128xf32>
    %c0_29 = arith.constant 0 : index
    %c0_30 = arith.constant 0 : index
    %c0_31 = arith.constant 0 : index
    %92 = vector.load %arg7[%c0_29, %c0_30, %c0_31] : memref<1x1x128xf32, #tpu.memory_space<vmem>>, vector<1x1x128xf32>
    %93 = vector.shape_cast %92 : vector<1x1x128xf32> to vector<1x128xf32>
    %94 = vector.shape_cast %91 : vector<1x128xf32> to vector<1x1x128xf32>
    tpu.vector_store %arg7[%c0_29, %c0_30, %c0_31], %94 {strides = array<i32>} : memref<1x1x128xf32, #tpu.memory_space<vmem>>, vector<1x1x128xf32>,
    return
  }
  func.func @transform_0(%arg0: i32) -> (i32, i32, i32) {
    %c0_i32 = arith.constant 0 : i32
    %c0_i32_0 = arith.constant 0 : i32
    %c0_i32_1 = arith.constant 0 : i32
    return %arg0, %c0_i32, %c0_i32_0 : i32, i32, i32
  }
  func.func @transform_1(%arg0: i32) -> (i32, i32) {
    %c0_i32 = arith.constant 0 : i32
    %c0_i32_0 = arith.constant 0 : i32
    %c0_i32_1 = arith.constant 0 : i32
    return %c0_i32, %c0_i32_0 : i32, i32
  }
  func.func @transform_2(%arg0: i32) -> (i32, i32) {
    %c0_i32 = arith.constant 0 : i32
    %c0_i32_0 = arith.constant 0 : i32
    %c0_i32_1 = arith.constant 0 : i32
    return %c0_i32, %c0_i32_0 : i32, i32
  }
  func.func @transform_3(%arg0: i32) -> (i32, i32) {
    %c0_i32 = arith.constant 0 : i32
    %c0_i32_0 = arith.constant 0 : i32
    %c0_i32_1 = arith.constant 0 : i32
    return %c0_i32, %c0_i32_0 : i32, i32
  }
  func.func @transform_4(%arg0: i32) -> (i32, i32) {
    %c0_i32 = arith.constant 0 : i32
    %c0_i32_0 = arith.constant 0 : i32
    %c0_i32_1 = arith.constant 0 : i32
    return %c0_i32, %c0_i32_0 : i32, i32
  }
  func.func @transform_5(%arg0: i32) -> (i32, i32) {
    %c0_i32 = arith.constant 0 : i32
    %c0_i32_0 = arith.constant 0 : i32
    %c0_i32_1 = arith.constant 0 : i32
    return %c0_i32, %c0_i32_0 : i32, i32
  }
  func.func @transform_6(%arg0: i32) -> (i32, i32, i32) {
    %c0_i32 = arith.constant 0 : i32
    %c0_i32_0 = arith.constant 0 : i32
    %c0_i32_1 = arith.constant 0 : i32
    return %arg0, %c0_i32, %c0_i32_0 : i32, i32, i32
  }
}

</mosaic_0001>

<bundles_post_ra>
// kernel: cadrup_forward.1
= control target key start
LH: loop header
LB: loop body
LE: loop exit
PB: predicated region body
PF: predicated region fallthrough
CT: control target
= control target key end

     0   :  { %s1598_s21 = smov 0   ;;  %s1906_s0 = inlined_call_operand.vmem [shape: bf16[2,256,32], index: 0, kind: input, shape index: {}]   ;;  %s1907_s1 = inlined_call_operand.vmem [shape: bf16[32,64], index: 1, kind: input, shape index: {}]   ;;  %s1908_s2 = inlined_call_operand.vmem [shape: bf16[64,32], index: 2, kind: input, shape index: {}]   ;;  %s1909_s3 = inlined_call_operand.vmem [shape: bf16[32,416], index: 3, kind: input, shape index: {}]   ;;  %s1910_s4 = inlined_call_operand.vmem [shape: bf16[384,30], index: 4, kind: input, shape index: {}]   ;;  %s1911_s5 = inlined_call_operand.vmem [shape: f32[1,542], index: 5, kind: input, shape index: {}]   ;;  %s1912_s6 = inlined_call_operand.vmem [shape: f32[2,1,128], index: 6, kind: output, shape index: {}]  }
   0x1 LB: > { %s1200_s22 = sadd.s32 4294967295, %s1551_s21   ;;  %p1204_p0 = scmp.ge.s32.totalorder %s1551_s21, 1  ;;  %s1551_s21 = sphi %s1598_s21, %s16_s21  }
   0x2   : > { %p212_p1 = scmp.lt.s32.totalorder %s1551_s21, 3 }
   0x4   : > { %p213_p2 = pnand %p1204_p0, %p212_p1 }
   0x5   : > { %p240_p3 = scmp.lt.s32.totalorder (!%p213_p2), %s1200_s22, 1  ;;  %s1553_s9 = smov (!%p213_p2), 64  }
   0x6   : > { %216 = sbr.rel (%p213_p2) target bundleno = 1386 (0x56a), region = 44  ;;  %s1554_s12 = smov (!%p213_p2), 32  }
   0x7   : > { %s1555_s7 = smov (!%p213_p2), 96   ;;  %s1557_s13 = smov (!%p213_p2), 118  }
   0x8   : > { %s1558_s14 = smov (!%p213_p2), 108   ;;  %s1562_s15 = smov (!%p213_p2), 10  }
   0xb   : > { %v1464_v0 = vld [vmem:[%s1907_s1 + $0x8] sm:$0xff]  ;;  %v1463_v1 = vld [vmem:[%s1907_s1] sm:$0xff]  ;;  %s1914_s22 = smov (!%p240_p3, %s1200_s22), 1  ;;  %vm381_vm0 = vcmask 261120   ;;  %vm551_vm1 = vcmask 523264   ;;  %v1468_v43 = vld [vmem:[%s1908_s2 + $0x18] sm:$0xff] }
   0xc   : > { %436 = vmatpush.bf16.msra.mxu0 %v1464_v0  ;;  %1501 = vmatpush.bf16.msra.mxu1 %v1464_v0  ;;  %s1446_s27 = sshll.u32 %s1914_s22, 7  ;;  %v1655_v18 = vld [vmem:[%s1911_s5] sm:$0x1f]  ;;  %vm796_vm2 = vcmask 131184   ;;  %vm881_vm3 = vcmask 785408   ;;  %vm1118_vm4 = vcmask 237728   ;;  %s247_s18 = scalar_lea.vmem %s1912_s6, %s1914_s22 }
   0xd   : > { %1502 = vmatpush.bf16.msra.mxu2 %v1464_v0  ;;  %1503 = vmatpush.bf16.msra.mxu3 %v1464_v0  ;;  %s1618_s30 = scalar_lea.vmem %s1906_s0, %s1446_s27  ;;  %v1658_v20 = vperm.slane %v1655_v18, 0  ;;  %vm1092_vm5 = vcmask 155728   ;;  %vm1073_vm6 = vcmask 73728   ;;  %vm807_vm7 = vcmask 16384  }
   0xe   : > { %v1447_v2 = vld [vmem:[%s1618_s30] sm:$0xff]  ;;  %v1448_v3 = vld [vmem:[%s1618_s30 + $0x8] sm:$0xff]  ;;  %v1454_v4 = vld [vmem:[%s1618_s30 + $0x38] sm:$0xff]  ;;  %vm1148_vm8 = vcmask 80896   ;;  %vm1150_vm9 = vcmask 195584  }
   0xf   : > { %v1449_v5 = vld [vmem:[%s1618_s30 + $0x10] sm:$0xff]  ;;  %v1455_v6 = vld [vmem:[%s1618_s30 + $0x40] sm:$0xff]  ;;  %v1458_v7 = vld [vmem:[%s1618_s30 + $0x58] sm:$0xff]  ;;  %655 = vrot.lane.b32.xlu0 %v1658_v20, %s1553_s9 }
  0x10   : > { %437 = vmatpush.bf16.msra.mxu0 %v1463_v1  ;;  %1504 = vmatpush.bf16.msra.mxu1 %v1463_v1  ;;  %v1450_v8 = vld [vmem:[%s1618_s30 + $0x18] sm:$0xff]  ;;  %v1456_v9 = vld [vmem:[%s1618_s30 + $0x48] sm:$0xff]  ;;  %v1459_v10 = vld [vmem:[%s1618_s30 + $0x60] sm:$0xff] }
  0x11   : > { %1505 = vmatpush.bf16.msra.mxu2 %v1463_v1  ;;  %1506 = vmatpush.bf16.msra.mxu3 %v1463_v1  ;;  %v1451_v11 = vld [vmem:[%s1618_s30 + $0x20] sm:$0xff]  ;;  %v1461_v12 = vld [vmem:[%s1618_s30 + $0x70] sm:$0xff]  ;;  %v1460_v14 = vld [vmem:[%s1618_s30 + $0x68] sm:$0xff] }
  0x12   : > { %v1457_v13 = vld [vmem:[%s1618_s30 + $0x50] sm:$0xff]  ;;  %v1452_v15 = vld [vmem:[%s1618_s30 + $0x28] sm:$0xff]  ;;  %v1462_v16 = vld [vmem:[%s1618_s30 + $0x78] sm:$0xff]  ;;  %726 = vrot.lane.b32.xlu2 %v1658_v20, %s1554_s12 }
  0x13   : > { %1279 = vmatmul.msk.bf16.vlgmr.msra.gmra.mxu0 %vm381_vm0, %v1447_v2  ;;  %1286 = vmatmul.msk.bf16.vlgmr.msra.gmra.mxu1 %vm381_vm0, %v1454_v4  ;;  %v1453_v17 = vld [vmem:[%s1618_s30 + $0x30] sm:$0xff] }
  0x14   : > { %1290 = vmatmul.msk.bf16.vlgmr.msra.gmra.mxu2 %vm381_vm0, %v1458_v7  ;;  %1293 = vmatmul.msk.bf16.vlgmr.msra.gmra.mxu3 %vm381_vm0, %v1461_v12 }
  0x15   : > { %665 = vmatpush.bf16.msrb.mxu1 %v1468_v43 }
  0x23   : > { %1280 = vmatmul.msk.bf16.gmra.mxu0 %vm381_vm0, %v1448_v3  ;;  %1287 = vmatmul.msk.bf16.gmra.mxu1 %vm381_vm0, %v1455_v6 }
  0x24   : > { %1291 = vmatmul.msk.bf16.gmra.mxu2 %vm381_vm0, %v1459_v10  ;;  %1294 = vmatmul.msk.bf16.gmra.mxu3 %vm381_vm0, %v1462_v16 }
  0x33   : > { %1281 = vmatmul.msk.bf16.gmra.mxu0 %vm381_vm0, %v1449_v5  ;;  %1288 = vmatmul.msk.bf16.gmra.mxu1 %vm381_vm0, %v1456_v9 }
  0x34   : > { %1292 = vmatmul.msk.bf16.gmra.mxu2 %vm381_vm0, %v1460_v14 }
  0x43   : > { %1282 = vmatmul.msk.bf16.gmra.mxu0 %vm381_vm0, %v1450_v8  ;;  %1289 = vmatmul.msk.bf16.gmra.mxu1 %vm381_vm0, %v1457_v13 }
  0x53   : > { %1283 = vmatmul.msk.bf16.gmra.mxu0 %vm381_vm0, %v1451_v11 }
  0x63   : > { %1284 = vmatmul.msk.bf16.gmra.mxu0 %vm381_vm0, %v1452_v15 }
  0x73   : > { %1285 = vmatmul.msk.bf16.gmra.mxu0 %vm381_vm0, %v1453_v17 }
  0x90   : > { %v439_v19 = vpop.f32.mrf.mxu0  ;;  %v474_v37 = vpop.f32.mrf.mxu1 }
  0x91   : > { %v440_v21 = vadd.f32 %v439_v19, %v1658_v20 }
  0x93   : > { %v519_v23 = vmax.f32 %v440_v21, 0.0 }
  0x95   : > { %v552_v26 = vsel %vm551_vm1, %v519_v23, 0.0 }
  0x97   : > { %v1672_v46 = vpop.f32.mrf.mxu2 }
  0x98   : > { %v441_v22 = vpop.f32.mrf.mxu0  ;;  %v476_v39 = vpop.f32.mrf.mxu1 }
  0x99   : > { %v442_v24 = vadd.f32 %v441_v22, %v1658_v20 }
  0x9b   : > { %v520_v25 = vmax.f32 %v442_v24, 0.0 }
  0x9d   : > { %v553_v27 = vsel %vm551_vm1, %v520_v25, 0.0 }
  0x9e   : > { %v554_v28 = vadd.f32 %v553_v27, %v552_v26  ;;  %v475_v27 = vadd.f32 %v474_v37, %v1658_v20 }
  0x9f   : > { %v1677_v53 = vpop.f32.mrf.mxu2 }
  0xa0   : > { %v444_v29 = vpop.f32.mrf.mxu0  ;;  %v1667_v41 = vpop.f32.mrf.mxu1  ;;  %v533_v37 = vmax.f32 %v475_v27, 0.0 }
  0xa1   : > { %v445_v30 = vadd.f32 %v444_v29, %v1658_v20 }
  0xa3   : > { %v521_v31 = vmax.f32 %v445_v30, 0.0 }
  0xa5   : > { %v555_v32 = vsel %vm551_vm1, %v521_v31, 0.0 }
  0xa6   : > { %v556_v33 = vadd.f32 %v555_v32, %v554_v28 }
  0xa7   : > { %v1688_v8 = vpop.f32.mrf.mxu2 }
  0xa8   : > { %v446_v34 = vpop.f32.mrf.mxu0  ;;  %v481_v45 = vpop.f32.mrf.mxu1 }
  0xa9   : > { %v447_v47 = vadd.f32 %v446_v34, %v1658_v20  ;;  %v1467_v34 = vld [vmem:[%s1908_s2 + $0x10] sm:$0xff] }
  0xaa   : > { %666 = vmatpush.bf16.msrb.mxu1 %v1467_v34 }
  0xab   : > { %v522_v50 = vmax.f32 %v447_v47, 0.0 }
  0xad   : > { %v557_v56 = vsel %vm551_vm1, %v522_v50, 0.0 }
  0xae   : > { %v558_v63 = vadd.f32 %v557_v56, %v556_v33  ;;  %v1698_v33 = vpop.f32.mrf.mxu3 }
  0xaf   : > { %v501_v30 = vpop.f32.mrf.mxu2 }
  0xb0   : > { %v449_v35 = vpop.f32.mrf.mxu0  ;;  %v484_v52 = vpop.f32.mrf.mxu1 }
  0xb1   : > { %v450_v49 = vadd.f32 %v449_v35, %v1658_v20  ;;  %v477_v35 = vadd.f32 %v476_v39, %v1658_v20  ;;  %v579_v39 = vsel %vm551_vm1, %v533_v37, 0.0  ;;  %v1330_v37 = vld [vmem:[%s1909_s3 + $0x20] sm:$0xf] }
  0xb3   : > { %v523_v54 = vmax.f32 %v450_v49, 0.0  ;;  %v534_v47 = vmax.f32 %v477_v35, 0.0  ;;  %v510_v35 = vadd.f32 %v1698_v33, %v1658_v20  ;;  %v1332_v33 = vld [vmem:[%s1909_s3 + $0x30] sm:$0xf0] }
  0xb5   : > { %v559_v60 = vsel %vm551_vm1, %v523_v54, 0.0  ;;  %v485_v54 = vadd.f32 %v484_v52, %v1658_v20  ;;  %v581_v56 = vsel %vm551_vm1, %v534_v47, 0.0 }
  0xb6   : > { %v560_v3 = vadd.f32 %v559_v60, %v558_v63 }
  0xb7   : > { %v504_v60 = vpop.f32.mrf.mxu2 }
  0xb8   : > { %v451_v36 = vpop.f32.mrf.mxu0  ;;  %v486_v7 = vpop.f32.mrf.mxu1  ;;  %v505_v27 = vadd.f32 %v504_v60, %v1658_v20 }
  0xb9   : > { %v452_v51 = vadd.f32 %v451_v36, %v1658_v20 }
  0xbb   : > { %v524_v57 = vmax.f32 %v452_v51, 0.0 }
  0xbd   : > { %v561_v0 = vsel %vm551_vm1, %v524_v57, 0.0 }
  0xbe   : > { %v562_v9 = vadd.f32 %v561_v0, %v560_v3 }
  0xc0   : > { %v454_v38 = vpop.f32.mrf.mxu0  ;;  %v489_v29 = vpop.f32.mrf.mxu1 }
  0xc1   : > { %v455_v55 = vadd.f32 %v454_v38, %v1658_v20  ;;  %v490_v63 = vadd.f32 %v489_v29, %v1658_v20 }
  0xc3   : > { %v525_v61 = vmax.f32 %v455_v55, 0.0 }
  0xc5   : > { %v563_v4 = vsel %vm551_vm1, %v525_v61, 0.0  ;;  %v511_v61 = vpop.f32.mrf.mxu3 }
  0xc6   : > { %v564_v13 = vadd.f32 %v563_v4, %v562_v9  ;;  %v495_v4 = vadd.f32 %v1672_v46, %v1658_v20  ;;  %v497_v9 = vadd.f32 %v1677_v53, %v1658_v20  ;;  %v1466_v46 = vld [vmem:[%s1908_s2 + $0x8] sm:$0xff] }
  0xc7   : > { %667 = vmatpush.bf16.msrb.mxu1 %v1466_v46 }
  0xc8   : > { %v456_v40 = vpop.f32.mrf.mxu0  ;;  %v542_v53 = vmax.f32 %v497_v9, 0.0 }
  0xc9   : > { %v457_v58 = vadd.f32 %v456_v40, %v1658_v20 }
  0xcb   : > { %v526_v1 = vmax.f32 %v457_v58, 0.0  ;;  %v487_v58 = vadd.f32 %v486_v7, %v1658_v20 }
  0xcd   : > { %v565_v10 = vsel %vm551_vm1, %v526_v1, 0.0 }
  0xce   : > { %v566_v19 = vadd.f32 %v565_v10, %v564_v13 }
  0xd0   : > { %v459_v42 = vpop.f32.mrf.mxu0 }
  0xd1   : > { %v460_v62 = vadd.f32 %v459_v42, %v1658_v20  ;;  %v480_v42 = vadd.f32 %v1667_v41, %v1658_v20  ;;  %v491_v41 = vpop.f32.mrf.mxu1 }
  0xd2   : > { %v492_v52 = vadd.f32 %v491_v41, %v1658_v20 }
  0xd3   : > { %v527_v5 = vmax.f32 %v460_v62, 0.0  ;;  %v535_v51 = vmax.f32 %v480_v42, 0.0  ;;  %v537_v62 = vmax.f32 %v485_v54, 0.0  ;;  %v1475_v42 = vld [vmem:[%s1909_s3 + $0x2c] sm:$0xf0] }
  0xd4   : > { %v1331_v47 = vor.u32 %v1475_v42, %v1330_v37  ;;  %v1469_v54 = vld [vmem:[%s1909_s3 + $0x4] sm:$0xf]  ;;  %v727_v42 = vpop.permute.xlu2 %726 }
  0xd5   : > { %v567_v15 = vsel %vm551_vm1, %v527_v5, 0.0  ;;  %v587_v5 = vsel %vm551_vm1, %v537_v62, 0.0 }
  0xd6   : > { %v568_v23 = vadd.f32 %v567_v15, %v566_v19  ;;  %v506_v19 = vpop.f32.mrf.mxu2  ;;  %750 = vmatpush.bf16.msrb.mxu2 %v1331_v47 }
  0xd8   : > { %v461_v44 = vpop.f32.mrf.mxu0 }
  0xd9   : > { %v462_v2 = vadd.f32 %v461_v44, %v1658_v20 }
  0xdb   : > { %v528_v11 = vmax.f32 %v462_v2, 0.0  ;;  %v538_v2 = vmax.f32 %v487_v58, 0.0 }
  0xdd   : > { %v569_v21 = vsel %vm551_vm1, %v528_v11, 0.0  ;;  %v589_v10 = vsel %vm551_vm1, %v538_v2, 0.0  ;;  %v540_v11 = vmax.f32 %v492_v52, 0.0 }
  0xde   : > { %v570_v26 = vadd.f32 %v569_v21, %v568_v23  ;;  %v514_v21 = vpop.f32.mrf.mxu3 }
  0xdf   : > { %v515_v58 = vadd.f32 %v514_v21, %v1658_v20  ;;  %v1474_v21 = vld [vmem:[%s1909_s3 + $0x2c] sm:$0xf] }
  0xe0   : > { %v464_v48 = vpop.f32.mrf.mxu0 }
  0xe1   : > { %v465_v6 = vadd.f32 %v464_v48, %v1658_v20  ;;  %v482_v48 = vadd.f32 %v481_v45, %v1658_v20  ;;  %v583_v45 = vsel %vm551_vm1, %v535_v51, 0.0 }
  0xe3   : > { %v529_v16 = vmax.f32 %v465_v6, 0.0  ;;  %v536_v57 = vmax.f32 %v482_v48, 0.0  ;;  %v539_v6 = vmax.f32 %v490_v63, 0.0  ;;  %v1314_v48 = vld [vmem:[%s1909_s3] sm:$0xf] }
  0xe5   : > { %v571_v24 = vsel %vm551_vm1, %v529_v16, 0.0  ;;  %v585_v1 = vsel %vm551_vm1, %v536_v57, 0.0  ;;  %v591_v15 = vsel %vm551_vm1, %v539_v6, 0.0  ;;  %v502_v16 = vadd.f32 %v501_v30, %v1658_v20 }
  0xe6   : > { %v572_v31 = vadd.f32 %v571_v24, %v570_v26  ;;  %v597_v30 = vsel %vm551_vm1, %v542_v53, 0.0 }
  0xe7   : > { %v544_v26 = vmax.f32 %v502_v16, 0.0 }
  0xe8   : > { %v466_v59 = vpop.f32.mrf.mxu0 }
  0xe9   : > { %v467_v12 = vadd.f32 %v466_v59, %v1658_v20  ;;  %v601_v34 = vsel %vm551_vm1, %v544_v26, 0.0  ;;  %v1324_v26 = vld [vmem:[%s1909_s3 + $0x18] sm:$0xf0] }
  0xeb   : > { %v530_v22 = vmax.f32 %v467_v12, 0.0  ;;  %v500_v12 = vadd.f32 %v1688_v8, %v1658_v20  ;;  %v1465_v8 = vld [vmem:[%s1908_s2] sm:$0xff] }
  0xec   : > { %668 = vmatpush.bf16.msrb.mxu1 %v1465_v8 }
  0xed   : > { %v573_v28 = vsel %vm551_vm1, %v530_v22, 0.0  ;;  %v593_v22 = vsel %vm551_vm1, %v540_v11, 0.0  ;;  %v543_v23 = vmax.f32 %v500_v12, 0.0 }
  0xee   : > { %v574_v40 = vadd.f32 %v573_v28, %v572_v31  ;;  %v507_v28 = vadd.f32 %v506_v19, %v1658_v20  ;;  %v1476_v19 = vld [vmem:[%s1909_s3 + $0x34] sm:$0xf0] }
  0xef   : > { %v599_v31 = vsel %vm551_vm1, %v543_v23, 0.0  ;;  %v1472_v23 = vld [vmem:[%s1909_s3 + $0x14] sm:$0xf0] }
  0xf0   : > { %v469_v14 = vpop.f32.mrf.mxu0 }
  0xf1   : > { %v470_v17 = vadd.f32 %v469_v14, %v1658_v20  ;;  %v541_v14 = vmax.f32 %v495_v4, 0.0 }
  0xf3   : > { %v531_v25 = vmax.f32 %v470_v17, 0.0 }
  0xf5   : > { %v575_v36 = vsel %vm551_vm1, %v531_v25, 0.0  ;;  %v595_v25 = vsel %vm551_vm1, %v541_v14, 0.0 }
  0xf6   : > { %v576_v44 = vadd.f32 %v575_v36, %v574_v40  ;;  %v545_v36 = vmax.f32 %v505_v27, 0.0  ;;  %v724_v27 = vperm.slane %v1655_v18, 2 }
  0xf8   : > { %v471_v32 = vpop.f32.mrf.mxu0  ;;  %v603_v57 = vsel %vm551_vm1, %v545_v36, 0.0  ;;  %730 = vrot.lane.b32.xlu1 %v724_v27, %s1554_s12 }
  0xf9   : > { %v472_v38 = vadd.f32 %v471_v32, %v1658_v20 }
  0xfb   : > { %v532_v43 = vmax.f32 %v472_v38, 0.0  ;;  %v546_v38 = vmax.f32 %v507_v28, 0.0  ;;  %v723_v28 = vperm.slane %v1655_v18, 1 }
  0xfd   : > { %v577_v49 = vsel %vm551_vm1, %v532_v43, 0.0  ;;  %v1473_v43 = vld [vmem:[%s1909_s3 + $0x24] sm:$0xf]  ;;  %728 = vrot.lane.b32.xlu0 %v723_v28, %s1554_s12 }
  0xfe   : > { %v578_v50 = vadd.f32 %v577_v49, %v576_v44  ;;  %v512_v44 = vadd.f32 %v511_v61, %v1658_v20  ;;  %v1471_v49 = vld [vmem:[%s1909_s3 + $0xc] sm:$0xf0]  ;;  %v1335_v51 = vor.u32 %v1473_v43, %v1332_v33 }
  0xff   : > { %v1315_v41 = vor.u32 %v1471_v49, %v1314_v48 }
 0x100   : > { %v580_v55 = vadd.f32 %v579_v39, %v578_v50  ;;  %v516_v39 = vpop.f32.mrf.mxu3  ;;  %763 = vmatpush.bf16.msrb.mxu3 %v1335_v51  ;;  %v548_v61 = vmax.f32 %v512_v44, 0.0 }
 0x101   : > { %v517_v62 = vadd.f32 %v516_v39, %v1658_v20  ;;  %751 = vmatpush.bf16.msrb.mxu2 %v1315_v41  ;;  %v1322_v20 = vld [vmem:[%s1909_s3 + $0x8] sm:$0xf] }
 0x102   : > { %v582_v59 = vadd.f32 %v581_v56, %v580_v55  ;;  %v1316_v55 = vld [vmem:[%s1909_s3 + $0x10] sm:$0xf0]  ;;  %v547_v56 = vmax.f32 %v510_v35, 0.0  ;;  %v609_v52 = vsel %vm551_vm1, %v548_v61, 0.0 }
 0x103   : > { %v1319_v60 = vor.u32 %v1469_v54, %v1316_v55 }
 0x104   : > { %v584_v0 = vadd.f32 %v583_v45, %v582_v59  ;;  %v605_v45 = vsel %vm551_vm1, %v546_v38, 0.0 }
 0x105   : > { %764 = vmatpush.bf16.msrb.mxu3 %v1319_v60 }
 0x106   : > { %v586_v3 = vadd.f32 %v585_v1, %v584_v0  ;;  %v607_v0 = vsel %vm551_vm1, %v547_v56, 0.0  ;;  %v549_v1 = vmax.f32 %v515_v58, 0.0 }
 0x108   : > { %v588_v7 = vadd.f32 %v587_v5, %v586_v3  ;;  %v550_v3 = vmax.f32 %v517_v62, 0.0  ;;  %v611_v5 = vsel %vm551_vm1, %v549_v1, 0.0 }
 0x10a   : > { %v590_v13 = vadd.f32 %v589_v10, %v588_v7  ;;  %v613_v7 = vsel %vm551_vm1, %v550_v3, 0.0  ;;  %v1482_v3 = vld [vmem:[%s1910_s4 + $0x28] sm:$0xff] }
 0x10c   : > { %v592_v17 = vadd.f32 %v591_v15, %v590_v13 }
 0x10e   : > { %v594_v24 = vadd.f32 %v593_v22, %v592_v17  ;;  %v1338_v17 = vld [vmem:[%s1909_s3 + $0x28] sm:$0xf]  ;;  %v1340_v22 = vld [vmem:[%s1909_s3 + $0x38] sm:$0xf0] }
 0x10f   : > { %v1339_v53 = vor.u32 %v1476_v19, %v1338_v17  ;;  %v1343_v8 = vor.u32 %v1474_v21, %v1340_v22  ;;  %v1497_v17 = vld [vmem:[%s1910_s4 + $0xa0] sm:$0xff]  ;;  %v1488_v19 = vld [vmem:[%s1910_s4 + $0x58] sm:$0xff]  ;;  %v1495_v22 = vld [vmem:[%s1910_s4 + $0x90] sm:$0xff] }
 0x110   : > { %v596_v29 = vadd.f32 %v595_v25, %v594_v24  ;;  %v1470_v24 = vld [vmem:[%s1909_s3 + $0xc] sm:$0xf]  ;;  %v1323_v25 = vor.u32 %v1472_v23, %v1322_v20  ;;  %v1496_v21 = vld [vmem:[%s1910_s4 + $0x98] sm:$0xff] }
 0x111   : > { %776 = vmatpush.bf16.msra.mxu2 %v1339_v53  ;;  %789 = vmatpush.bf16.msra.mxu3 %v1343_v8  ;;  %v1487_v53 = vld [vmem:[%s1910_s4 + $0x50] sm:$0xff]  ;;  %v1486_v8 = vld [vmem:[%s1910_s4 + $0x48] sm:$0xff] }
 0x112   : > { %v598_v32 = vadd.f32 %v597_v30, %v596_v29  ;;  %v1327_v29 = vor.u32 %v1470_v24, %v1324_v26  ;;  %v725_v30 = vperm.slane %v1655_v18, 3  ;;  %v1494_v20 = vld [vmem:[%s1910_s4 + $0x88] sm:$0xff]  ;;  %v1485_v24 = vld [vmem:[%s1910_s4 + $0x40] sm:$0xff] }
 0x114   : > { %v600_v40 = vadd.f32 %v599_v31, %v598_v32  ;;  %732 = vrot.lane.b32.xlu1 %v725_v30, %s1554_s12  ;;  %v656_v31 = vpop.permute.xlu0 %655  ;;  %s1556_s12 = smov 114  }
 0x115   : > { %777 = vmatpush.bf16.msra.mxu2 %v1323_v25  ;;  %790 = vmatpush.bf16.msra.mxu3 %v1327_v29  ;;  %v1493_v25 = vld [vmem:[%s1910_s4 + $0x80] sm:$0xff] }
 0x116   : > { %v602_v50 = vadd.f32 %v601_v34, %v600_v40 }
 0x118   : > { %v604_v59 = vadd.f32 %v603_v57, %v602_v50 }
 0x11a   : > { %v606_v63 = vadd.f32 %v605_v45, %v604_v59 }
 0x11c   : > { %v608_v2 = vadd.f32 %v607_v0, %v606_v63 }
 0x11e   : > { %v610_v4 = vadd.f32 %v609_v52, %v608_v2  ;;  %v1484_v2 = vld [vmem:[%s1910_s4 + $0x38] sm:$0xff]  ;;  %v1483_v52 = vld [vmem:[%s1910_s4 + $0x30] sm:$0xff] }
 0x11f   : > { %1034 = vmatpush.bf16.msra.mxu1 %v1484_v2 }
 0x120   : > { %v612_v6 = vadd.f32 %v611_v5, %v610_v4  ;;  %v1481_v4 = vld [vmem:[%s1910_s4 + $0x20] sm:$0xff]  ;;  %v1480_v5 = vld [vmem:[%s1910_s4 + $0x18] sm:$0xff] }
 0x122   : > { %v614_v9 = vadd.f32 %v613_v7, %v612_v6  ;;  %v1479_v6 = vld [vmem:[%s1910_s4 + $0x10] sm:$0xff] }
 0x123   : > { %1035 = vmatpush.bf16.msra.mxu1 %v1483_v52  ;;  %v1559_v52 = vmov 15  }
 0x124   : > { %v615_v10 = vrot.slane %v614_v9, 4  ;;  %1526 = vset.pattern.permute.xlu1 %v1559_v52 }
 0x126   : > { %v616_v11 = vadd.f32 %v615_v10, %v614_v9  ;;  %v1478_v9 = vld [vmem:[%s1910_s4 + $0x8] sm:$0xff]  ;;  %v1477_v10 = vld [vmem:[%s1910_s4] sm:$0xff] }
 0x127   : > { %1036 = vmatpush.bf16.msra.mxu1 %v1482_v3  ;;  %v1560_v3 = vmov 14  }
 0x128   : > { %v617_v12 = vrot.slane %v616_v11, 2  ;;  %1525 = vset.pattern.permute.xlu0 %v1560_v3 }
 0x12a   : > { %v618_v13 = vadd.f32 %v617_v12, %v616_v11  ;;  %v1492_v11 = vld [vmem:[%s1910_s4 + $0x78] sm:$0xff] }
 0x12b   : > { %1037 = vmatpush.bf16.msra.mxu1 %v1481_v4  ;;  %v1500_v12 = vld [vmem:[%s1910_s4 + $0xb8] sm:$0xff]  ;;  %v1561_v4 = vmov 16  }
 0x12c   : > { %v619_v14 = vrot.slane %v618_v13, 1  ;;  %1527 = vset.pattern.permute.xlu2 %v1561_v4 }
 0x12e   : > { %v620_v15 = vadd.f32 %v619_v14, %v618_v13  ;;  %v1491_v13 = vld [vmem:[%s1910_s4 + $0x70] sm:$0xff] }
 0x12f   : > { %1038 = vmatpush.bf16.msra.mxu1 %v1480_v5  ;;  %v1499_v14 = vld [vmem:[%s1910_s4 + $0xb0] sm:$0xff] }
 0x130   : > { %v621_v16 = vmul.f32 0.00390625, %v620_v15  ;;  %v1490_v15 = vld [vmem:[%s1910_s4 + $0x68] sm:$0xff] }
 0x132   : > { %v622_v46 = vpack.c.bf16 %v621_v16, %v621_v16  ;;  %v1498_v16 = vld [vmem:[%s1910_s4 + $0xa8] sm:$0xff] }
 0x133   : > { %1039 = vmatpush.bf16.msra.mxu1 %v1479_v6 }
 0x134   : > { %1311 = vmatmul.msk.bf16.vlgmr.msrb.gmra.mxu1 %vm551_vm1, %v622_v46  ;;  %v1489_v46 = vld [vmem:[%s1910_s4 + $0x60] sm:$0xff] }
 0x137   : > { %1040 = vmatpush.bf16.msra.mxu1 %v1478_v9 }
 0x13b   : > { %1041 = vmatpush.bf16.msra.mxu1 %v1477_v10 }
 0x16a   : > { %v731_v38 = vpop.permute.xlu1 %730 }
 0x16f   : > { %v729_v40 = vpop.permute.xlu0 %728 }
 0x170   : > { %v735_v37 = vsel %vm381_vm0, %v729_v40, %v731_v38  ;;  %v734_v33 = vsel %vm381_vm0, %v727_v42, %v729_v40 }
 0x186   : > { %v733_v55 = vpop.permute.xlu1 %732 }
 0x187   : > { %v736_v57 = vsel %vm381_vm0, %v731_v38, %v733_v55 }
 0x1b1   : > { %v670_v32 = vpop.f32.mrf.mxu1 }
 0x1b2   : > { %v671_v34 = vadd.f32 %v670_v32, %v656_v31 }
 0x1b4   : > { %v674_v35 = vpack.c.bf16 %v671_v34, %v671_v34 }
 0x1b6   : > { %1344 = vmatmul.msk.bf16.vlgmr.msrb.gmra.mxu2 %vm381_vm0, %v674_v35  ;;  %1345 = vmatmul.msk.bf16.vlgmr.msrb.gmra.mxu3 %vm381_vm0, %v674_v35 }
 0x1b7   : > { %1047 = vmatpush.bf16.msrb.mxu2 %v1492_v11  ;;  %1060 = vmatpush.bf16.msrb.mxu3 %v1500_v12 }
 0x1b9   : > { %v672_v36 = vpop.f32.mrf.mxu1 }
 0x1bb   : > { %1048 = vmatpush.bf16.msrb.mxu2 %v1491_v13  ;;  %1061 = vmatpush.bf16.msrb.mxu3 %v1499_v14 }
 0x1bf   : > { %1049 = vmatpush.bf16.msrb.mxu2 %v1490_v15  ;;  %1062 = vmatpush.bf16.msrb.mxu3 %v1498_v16 }
 0x1c3   : > { %1050 = vmatpush.bf16.msrb.mxu2 %v1489_v46  ;;  %1063 = vmatpush.bf16.msrb.mxu3 %v1497_v17 }
 0x1c6   : > { %1346 = vmatmul.msk.bf16.vlgmr.msra.gmra.mxu2 %vm381_vm0, %v674_v35  ;;  %1347 = vmatmul.msk.bf16.vlgmr.msra.gmra.mxu3 %vm381_vm0, %v674_v35  ;;  %v1032_v35 = vperm.slane %v1655_v18, 4 }
 0x1c7   : > { %1051 = vmatpush.bf16.msrb.mxu2 %v1488_v19  ;;  %1064 = vmatpush.bf16.msrb.mxu3 %v1496_v21 }
 0x1cb   : > { %1052 = vmatpush.bf16.msrb.mxu2 %v1487_v53  ;;  %1065 = vmatpush.bf16.msrb.mxu3 %v1495_v22 }
 0x1cf   : > { %1053 = vmatpush.bf16.msrb.mxu2 %v1486_v8  ;;  %1066 = vmatpush.bf16.msrb.mxu3 %v1494_v20 }
 0x1d3   : > { %1054 = vmatpush.bf16.msrb.mxu2 %v1485_v24  ;;  %1067 = vmatpush.bf16.msrb.mxu3 %v1493_v25 }
 0x239   : > { %v753_v43 = vpop.f32.mrf.mxu2  ;;  %v766_v44 = vpop.f32.mrf.mxu3 }
 0x23a   : > { %v767_v47 = vadd.f32 %v766_v44, %v735_v37  ;;  %v1811_v49 = vadd.f32 %v753_v43, %v734_v33 }
 0x23c   : > { %v814_v48 = vmax.f32 %v767_v47, 0.0  ;;  %v813_v54 = vmax.f32 %v1811_v49, 0.0  ;;  %v797_v7 = vsel %vm796_vm2, %v1811_v49, -inf }
 0x23e   : > { %v818_v50 = vpack.c.bf16 %v814_v48, %v814_v48  ;;  %v817_v56 = vpack.c.bf16 %v813_v54, %v813_v54 }
 0x240   : > { %875 = vrot.lane.b32.xlu2 %v818_v50, %s1555_s7 }
 0x241   : > { %v755_v39 = vpop.f32.mrf.mxu2  ;;  %v768_v51 = vpop.f32.mrf.mxu3 }
 0x248   : > { %873 = vrot.lane.b32.xlu2 %v817_v56, %s1555_s7 }
 0x249   : > { %v779_v58 = vpop.f32.mrf.mxu2  ;;  %v792_v41 = vpop.f32.mrf.mxu3 }
 0x24a   : > { %v780_v59 = vadd.f32 %v779_v58, %v736_v57  ;;  %v793_v60 = vadd.f32 %v792_v41, %v733_v55 }
 0x24c   : > { %v815_v61 = vmax.f32 %v780_v59, 0.0  ;;  %v816_v45 = vmax.f32 %v793_v60, 0.0 }
 0x24e   : > { %v819_v62 = vpack.c.bf16 %v815_v61, %v815_v61  ;;  %v820_v63 = vpack.c.bf16 %v816_v45, %v816_v45 }
 0x250   : > { %879 = vrot.lane.b32.xlu1 %v820_v63, %s1555_s7  ;;  %877 = vrot.lane.b32.xlu0 %v819_v62, %s1555_s7 }
 0x251   : > { %v781_v0 = vpop.f32.mrf.mxu2  ;;  %v794_v1 = vpop.f32.mrf.mxu3 }
 0x27a   : > { %798 = vmax.xlane.f32.xlu0 %v797_v7 }
 0x29a   : > { %v876_v23 = vpop.permute.xlu2 %875 }
 0x2a2   : > { %v874_v26 = vpop.permute.xlu2 %873 }
 0x2a3   : > { %v882_v27 = vsel %vm881_vm3, %v874_v26, %v876_v23 }
 0x2a4   : > { %1042 = vmatmul.bf16.vlgmr.msra.gmra.mxu1 %v882_v27 }
 0x2c2   : > { %v880_v28 = vpop.permute.xlu1 %879  ;;  %v878_v29 = vpop.permute.xlu0 %877 }
 0x2c3   : > { %v883_v30 = vsel %vm881_vm3, %v876_v23, %v878_v29  ;;  %v884_v31 = vsel %vm881_vm3, %v878_v29, %v880_v28 }
 0x2c4   : > { %1055 = vmatmul.bf16.vlgmr.msrb.gmra.mxu2 %v883_v30  ;;  %1068 = vmatmul.bf16.vlgmr.msrb.gmra.mxu3 %v884_v31 }
 0x2ed   : > { %v799_v48 = vpop.xlane.xlu0 %798 }
 0x2ee   : > { %v800_v50 = vsub.f32 %v1811_v49, %v799_v48 }
 0x2f0   : > { %v801_v39 = vmul.f32 1.442695, %v800_v50 }
 0x2f2   : > { %1529 = vpow2.f32 %v801_v39 }
 0x2f8   : > { %v1530_v51 = vpop.eup %1529 }
 0x321   : > { %v1043_v32 = vpop.f32.mrf.mxu1 }
 0x322   : > { %v1044_v36 = vadd.f32 %v1043_v32, %v1032_v35 }
 0x329   : > { %v1045_v34 = vpop.f32.mrf.mxu1 }
 0x347   : > { %v1056_v38 = vpop.f32.mrf.mxu2  ;;  %v1069_v40 = vpop.f32.mrf.mxu3 }
 0x348   : > { %v1057_v37 = vadd.f32 %v1056_v38, %v1044_v36 }
 0x34a   : > { %v1070_v42 = vadd.f32 %v1069_v40, %v1057_v37 }
 0x34c   : > { %v1119_v43 = vsel %vm1118_vm4, %v1070_v42, -inf  ;;  %v1093_v44 = vsel %vm1092_vm5, %v1070_v42, -inf  ;;  %v1074_v18 = vsel %vm1073_vm6, %v1070_v42, -inf }
 0x34d   : > { %1120 = vmax.xlane.f32.xlu2 %v1119_v43  ;;  %1094 = vmax.xlane.f32.xlu1 %v1093_v44 }
 0x34f   : > { %v1058_v47 = vpop.f32.mrf.mxu2  ;;  %v1071_v33 = vpop.f32.mrf.mxu3 }
 0x365   : > { %804 = vrot.lane.b32.xlu2 %v1530_v51, %s1556_s12 }
 0x38e   : > { %1075 = vmax.xlane.f32.xlu2 %v1074_v18 }
 0x3c0   : > { %v1121_v54 = vpop.xlane.xlu2 %1120  ;;  %v1095_v55 = vpop.xlane.xlu1 %1094 }
 0x3c1   : > { %v1096_v56 = vsub.f32 %v1070_v42, %v1095_v55  ;;  %v1122_v60 = vsub.f32 %v1070_v42, %v1121_v54 }
 0x3c3   : > { %v1097_v57 = vmul.f32 1.442695, %v1096_v56  ;;  %v1123_v61 = vmul.f32 1.442695, %v1122_v60 }
 0x3c5   : > { %1531 = vpow2.f32 %v1097_v57 }
 0x3c6   : > { %1533 = vpow2.f32 %v1123_v61 }
 0x3c8   : > { %v805_v58 = vpop.permute.xlu2 %804 }
 0x3c9   : > { %v808_v41 = vsel %vm807_vm7, %v805_v58, 0.0 }
 0x3ca   : > { %809 = vadd.xlane.f32.xlu0 %v808_v41 }
 0x3cb   : > { %v1532_v59 = vpop.eup %1531 }
 0x3cc   : > { %1100 = vrot.lane.b32.xlu1 %v1532_v59, %s1557_s13  ;;  %v1534_v45 = vpop.eup %1533 }
 0x3de   : > { %1126 = vrot.lane.b32.xlu0 %v1534_v45, %s1558_s14 }
 0x401   : > { %v1076_v62 = vpop.xlane.xlu2 %1075 }
 0x402   : > { %v1077_v63 = vsub.f32 %v1070_v42, %v1076_v62 }
 0x404   : > { %v1078_v0 = vmul.f32 1.442695, %v1077_v63 }
 0x406   : > { %1535 = vpow2.f32 %v1078_v0 }
 0x40c   : > { %v1536_v1 = vpop.eup %1535 }
 0x40d   : > { %v1080_v2 = vsel %vm1073_vm6, %v1536_v1, 0.0 }
 0x40e   : > { %1081 = vadd.xlane.f32.xlu1 %v1080_v2 }
 0x43d   : > { %v810_v5 = vpop.xlane.xlu0 %809 }
 0x43e   : > { %1537 = vrcp.f32 %v810_v5  ;;  %v1101_v11 = vpop.permute.xlu1 %1100 }
 0x43f   : > { %v1103_v12 = vsel %vm1073_vm6, %v1101_v11, 0.0 }
 0x444   : > { %v1538_v6 = vpop.eup %1537 }
 0x445   : > { %v812_v7 = vmul.f32 %v1538_v6, %v1530_v51 }
 0x447   : > { %1087 = vperm.xlu0 %1525, %v812_v7   ;;  %1109 = vperm.xlu1 %1526, %v812_v7  }
 0x44f   : > { %1528 = vset.pattern.permute.xlu0 %v1561_v4 }
 0x450   : > { %v1127_v9 = vpop.permute.xlu0 %1126 }
 0x451   : > { %v1129_v10 = vsel %vm1073_vm6, %v1127_v9, 0.0 }
 0x452   : > { %1130 = vadd.xlane.f32.xlu2 %v1129_v10 }
 0x46a   : > { %1135 = vperm.xlu2 %1527, %v812_v7  }
 0x471   : > { %1104 = vadd.xlane.f32.xlu0 %v1103_v12 }
 0x472   : > { %1145 = vrot.lane.b32.xlu2 %v1811_v49, %s1562_s15 }
 0x481   : > { %v1082_v13 = vpop.xlane.xlu1 %1081 }
 0x482   : > { %1539 = vrcp.f32 %v1082_v13 }
 0x488   : > { %v1540_v14 = vpop.eup %1539 }
 0x489   : > { %v1084_v15 = vmul.f32 %v1540_v14, %v1536_v1 }
 0x4b9   : > { %v1088_v16 = vpop.permute.xlu0 %1087  ;;  %v1110_v49 = vpop.permute.xlu1 %1109 }
 0x4ba   : > { %v1090_v46 = vmul.f32 %v1088_v16, %v1084_v15 }
 0x4c5   : > { %v1131_v17 = vpop.xlane.xlu2 %1130 }
 0x4c6   : > { %1541 = vrcp.f32 %v1131_v17 }
 0x4cc   : > { %v1542_v19 = vpop.eup %1541 }
 0x4cd   : > { %v1133_v21 = vmul.f32 %v1542_v19, %v1534_v45  ;;  %v1136_v53 = vpop.permute.xlu2 %1135 }
 0x4cf   : > { %v1138_v22 = vmul.f32 %v1136_v53, %v1133_v21 }
 0x4d1   : > { %1140 = vrot.lane.b32.xlu1 %v1138_v22, %s1558_s14 }
 0x4d5   : > { %v1146_v29 = vpop.permute.xlu2 %1145 }
 0x4e4   : > { %v1105_v8 = vpop.xlane.xlu0 %1104 }
 0x4e5   : > { %1543 = vrcp.f32 %v1105_v8 }
 0x4eb   : > { %v1544_v20 = vpop.eup %1543 }
 0x4ec   : > { %v1107_v23 = vmul.f32 %v1544_v20, %v1532_v59 }
 0x4ee   : > { %v1112_v24 = vmul.f32 %v1110_v49, %v1107_v23 }
 0x4f0   : > { %1114 = vrot.lane.b32.xlu0 %v1112_v24, %s1557_s13 }
 0x543   : > { %v1141_v27 = vpop.permute.xlu1 %1140 }
 0x562   : > { %v1115_v25 = vpop.permute.xlu0 %1114 }
 0x563   : > { %v1117_v26 = vadd.f32 %v1115_v25, %v1090_v46 }
 0x565   : > { %v1143_v28 = vadd.f32 %v1141_v27, %v1117_v26 }
 0x567   : > { %v1149_v30 = vsel %vm1148_vm8, %v1143_v28, %v1146_v29 }
 0x568   : > { %v1151_v31 = vsel %vm1150_vm9, %v1149_v30, 0.0 }
 0x569   : > { %1152 = vst [vmem:[%s247_s18] sm:$0x1] %v1151_v31 }
 0x56a PF: > { %s16_s21 = sadd.s32 1, %s1551_s21  }
 0x56b   : > { %p13_p4 = scmp.ge.s32.totalorder %s16_s21, 4  }
 0x56d   :  { %15 = sbr.rel (!%p13_p4) target bundleno = 1 (0x1), region = 74 }

</bundles_post_ra>
